<compile_context>
chip_gen: v7x
topology: tpu7x:2x2x1
jax: 0.10.0
libtpu: 0.0.40
codegen_flags: <defaults>
</compile_context>

<pallas_src>
import functools

import jax
import jax.numpy as jnp
from jax.experimental import pallas as pl
from jax.experimental.pallas import tpu as pltpu

LANES = 128      # lane width of a vreg
BM_MAX = 1024    # max sublane rows per grid step (512 KiB f32 per input block)
ACC_ROWS = 8     # accumulator kept at one vreg: (8, 128)
SMOOTH = 1.0     # matches dice_loss.__init__ (self.smooth = 1.0)


def _round_up(a, b):
    return ((a + b - 1) // b) * b


def _sublane_multiple(dtype):
    # f32 -> 8, bf16 -> 16, int8/bool -> 32 (packed-sublane tiling rules).
    bits = jnp.dtype(dtype).itemsize * 8
    return max(8, 256 // bits)


def _dice_kernel(n_ref, x_ref, y_ref, out_ref, acc_i, acc_d, *, bm):
    step = pl.program_id(0)

    @pl.when(step == 0)
    def _init():
        acc_i[...] = jnp.zeros_like(acc_i)
        acc_d[...] = jnp.zeros_like(acc_d)

    # Mask padding / out-of-bounds rows of the (possibly partial) last block
    # by comparing the global flat element index against the true count.
    n_valid = n_ref[0]
    row_ids = jax.lax.broadcasted_iota(jnp.int32, (bm, LANES), 0)
    lane_ids = jax.lax.broadcasted_iota(jnp.int32, (bm, LANES), 1)
    flat_idx = (step * bm + row_ids) * LANES + lane_ids
    valid = flat_idx < n_valid

    p = jax.nn.sigmoid(x_ref[...].astype(jnp.float32))
    y = y_ref[...].astype(jnp.float32)
    p = jnp.where(valid, p, 0.0)
    y = jnp.where(valid, y, 0.0)

    # Reduce the (bm, 128) partials down to one vreg before accumulating so
    # the persistent scratch stays a single (8, 128) buffer per quantity.
    inter = jnp.sum((p * y).reshape(bm // ACC_ROWS, ACC_ROWS, LANES), axis=0)
    denom = jnp.sum((p + y).reshape(bm // ACC_ROWS, ACC_ROWS, LANES), axis=0)
    acc_i[...] += inter
    acc_d[...] += denom

    @pl.when(step == pl.num_programs(0) - 1)
    def _finalize():
        i_sum = jnp.sum(acc_i[...], keepdims=True)   # (1, 1)
        d_sum = jnp.sum(acc_d[...], keepdims=True)   # (1, 1)
        num = 2.0 * i_sum + SMOOTH
        den = d_sum + SMOOTH
        out_ref[...] = 1.0 - num / den


def dice_loss_pallas(logits, labels):
    # Keep native dtypes; the kernel casts to f32 (saves HBM bytes for
    # bf16 / int8 / bool inputs).
    x = logits.reshape(-1)
    y = labels.reshape(-1)
    n = x.shape[0]

    # Minimal layout pad so the flat vector reshapes to (rows, 128) with
    # `rows` a legal sublane multiple for both dtypes.  Usually zero.
    sub = max(_sublane_multiple(x.dtype), _sublane_multiple(y.dtype))
    n_pad = _round_up(n, sub * LANES)
    if n_pad != n:
        x = jnp.pad(x, (0, n_pad - n))
        y = jnp.pad(y, (0, n_pad - n))
    rows = n_pad // LANES
    x2 = x.reshape(rows, LANES)
    y2 = y.reshape(rows, LANES)

    # Big blocks for a memory-bound reduction; block equals the whole array
    # for small inputs (exact fit), 1024 rows otherwise.
    bm = min(BM_MAX, rows)
    grid = ((rows + bm - 1) // bm,)
    n_arr = jnp.array([n], dtype=jnp.int32)

    out = pl.pallas_call(
        functools.partial(_dice_kernel, bm=bm),
        out_shape=jax.ShapeDtypeStruct((1, 1), jnp.float32),
        grid_spec=pltpu.PrefetchScalarGridSpec(
            num_scalar_prefetch=1,
            grid=grid,
            in_specs=[
                pl.BlockSpec((bm, LANES), lambda i, n_ref: (i, 0)),
                pl.BlockSpec((bm, LANES), lambda i, n_ref: (i, 0)),
            ],
            out_specs=pl.BlockSpec((1, 1), lambda i, n_ref: (0, 0)),
            scratch_shapes=[
                pltpu.VMEM((ACC_ROWS, LANES), jnp.float32),  # sum(p*y) partials
                pltpu.VMEM((ACC_ROWS, LANES), jnp.float32),  # sum(p+y) partials
            ],
        ),
        compiler_params=pltpu.CompilerParams(
            dimension_semantics=("arbitrary",)
        ),
    )(n_arr, x2, y2)
    return out[0, 0]


def dice_loss_ref(logits, labels):
    p = jax.nn.sigmoid(logits.astype(jnp.float32)).reshape(-1)
    y = labels.astype(jnp.float32).reshape(-1)
    inter = jnp.sum(p * y)
    num = 2.0 * inter + SMOOTH
    den = jnp.sum(p) + jnp.sum(y) + SMOOTH
    return 1.0 - num / den


if __name__ == "__main__":
    key = jax.random.PRNGKey(0)
    k1, k2 = jax.random.split(key)
    # NCHW logits and binary labels, as the PyTorch module expects.
    logits = jax.random.normal(k1, (2, 4, 16, 16), dtype=jnp.float32)
    labels = jax.random.bernoulli(k2, p=0.3, shape=(2, 4, 16, 16)).astype(
        jnp.float32
    )

    loss = dice_loss_pallas(logits, labels)
    jax.block_until_ready(loss)

    ref = dice_loss_ref(logits, labels)
    assert jnp.allclose(loss, ref, atol=1e-5, rtol=1e-5), (loss, ref)

    print("KERNEL_OK")
</pallas_src>

<mosaic_0001>
module attributes {stable_mosaic.version = 11 : i64} {
  func.func @_dice_kernel(%arg0: i32, %arg1: memref<1xi32, #tpu.memory_space<smem>>, %arg2: memref<16x128xf32, #tpu.memory_space<vmem>>, %arg3: memref<16x128xf32, #tpu.memory_space<vmem>>, %arg4: memref<1x1xf32, #tpu.memory_space<vmem>>, %arg5: memref<8x128xf32, #tpu.memory_space<vmem>>, %arg6: memref<8x128xf32, #tpu.memory_space<vmem>>) attributes {dimension_semantics = [#tpu.dimension_semantics<arbitrary>], iteration_bounds = array<i64: 1>, scalar_prefetch = 1 : i64, scratch_operands = 2 : i64, tpu.core_type = #tpu.core_type<tc>, window_params = [{transform_indices = @transform_0, window_bounds = array<i64: 16, 128>}, {transform_indices = @transform_1, window_bounds = array<i64: 16, 128>}, {pipeline_mode = #tpu.pipeline_mode<synchronous>, transform_indices = @transform_2, window_bounds = array<i64: 1, 1>}]} {
    %c0_i32 = arith.constant 0 : i32
    %0 = arith.cmpi eq, %arg0, %c0_i32 : i32
    %1 = arith.extui %0 : i1 to i32
    %c0_i32_0 = arith.constant 0 : i32
    %2 = arith.cmpi ne, %1, %c0_i32_0 : i32
    scf.if %2 {
      %cst_19 = arith.constant 0.000000e+00 : f32
      %40 = vector.broadcast %cst_19 : f32 to vector<8x128xf32>
      %c0_20 = arith.constant 0 : index
      %c0_21 = arith.constant 0 : index
      %41 = vector.load %arg5[%c0_20, %c0_21] : memref<8x128xf32, #tpu.memory_space<vmem>>, vector<8x128xf32>
      tpu.vector_store %arg5[%c0_20, %c0_21], %40 {strides = array<i32>} : memref<8x128xf32, #tpu.memory_space<vmem>>, vector<8x128xf32>,
      %cst_22 = arith.constant 0.000000e+00 : f32
      %42 = vector.broadcast %cst_22 : f32 to vector<8x128xf32>
      %c0_23 = arith.constant 0 : index
      %c0_24 = arith.constant 0 : index
      %43 = vector.load %arg6[%c0_23, %c0_24] : memref<8x128xf32, #tpu.memory_space<vmem>>, vector<8x128xf32>
      tpu.vector_store %arg6[%c0_23, %c0_24], %42 {strides = array<i32>} : memref<8x128xf32, #tpu.memory_space<vmem>>, vector<8x128xf32>,
    } else {
    }
    %c0 = arith.constant 0 : index
    %3 = memref.load %arg1[%c0] : memref<1xi32, #tpu.memory_space<smem>>
    %4 = tpu.iota {dimensions = array<i32: 0>} : vector<16x128xi32>
    %5 = tpu.iota {dimensions = array<i32: 1>} : vector<16x128xi32>
    %c16_i32 = arith.constant 16 : i32
    %6 = arith.muli %arg0, %c16_i32 : i32
    %7 = vector.broadcast %6 : i32 to vector<16x128xi32>
    %8 = arith.addi %7, %4 : vector<16x128xi32>
    %c128_i32 = arith.constant 128 : i32
    %9 = vector.broadcast %c128_i32 : i32 to vector<16x128xi32>
    %10 = arith.muli %8, %9 : vector<16x128xi32>
    %11 = arith.addi %10, %5 : vector<16x128xi32>
    %12 = vector.broadcast %3 : i32 to vector<16x128xi32>
    %13 = arith.cmpi slt, %11, %12 : vector<16x128xi32>
    %c0_1 = arith.constant 0 : index
    %c0_2 = arith.constant 0 : index
    %14 = vector.load %arg2[%c0_1, %c0_2] : memref<16x128xf32, #tpu.memory_space<vmem>>, vector<16x128xf32>
    %15 = arith.negf %14 : vector<16x128xf32>
    %16 = math.exp %15 : vector<16x128xf32>
    %cst = arith.constant 1.000000e+00 : f32
    %17 = vector.broadcast %cst : f32 to vector<16x128xf32>
    %18 = arith.addf %17, %16 : vector<16x128xf32>
    %19 = arith.divf %17, %18 : vector<16x128xf32>
    %c0_3 = arith.constant 0 : index
    %c0_4 = arith.constant 0 : index
    %20 = vector.load %arg3[%c0_3, %c0_4] : memref<16x128xf32, #tpu.memory_space<vmem>>, vector<16x128xf32>
    %cst_5 = arith.constant 0.000000e+00 : f32
    %21 = vector.broadcast %cst_5 : f32 to vector<16x128xf32>
    %22 = arith.select %13, %19, %21 : vector<16x128xi1>, vector<16x128xf32>
    %cst_6 = arith.constant 0.000000e+00 : f32
    %23 = vector.broadcast %cst_6 : f32 to vector<16x128xf32>
    %24 = arith.select %13, %20, %23 : vector<16x128xi1>, vector<16x128xf32>
    %25 = arith.mulf %22, %24 : vector<16x128xf32>
    %26 = vector.shape_cast %25 : vector<16x128xf32> to vector<2x8x128xf32>
    %cst_7 = arith.constant dense<0.000000e+00> : vector<8x128xf32>
    %27 = vector.multi_reduction <add>, %26, %cst_7 [0] : vector<2x8x128xf32> to vector<8x128xf32>
    %28 = arith.addf %22, %24 : vector<16x128xf32>
    %29 = vector.shape_cast %28 : vector<16x128xf32> to vector<2x8x128xf32>
    %cst_8 = arith.constant dense<0.000000e+00> : vector<8x128xf32>
    %30 = vector.multi_reduction <add>, %29, %cst_8 [0] : vector<2x8x128xf32> to vector<8x128xf32>
    %c0_9 = arith.constant 0 : index
    %c0_10 = arith.constant 0 : index
    %31 = vector.load %arg5[%c0_9, %c0_10] : memref<8x128xf32, #tpu.memory_space<vmem>>, vector<8x128xf32>
    %32 = arith.addf %31, %27 : vector<8x128xf32>
    %c0_11 = arith.constant 0 : index
    %c0_12 = arith.constant 0 : index
    %33 = vector.load %arg5[%c0_11, %c0_12] : memref<8x128xf32, #tpu.memory_space<vmem>>, vector<8x128xf32>
    tpu.vector_store %arg5[%c0_11, %c0_12], %32 {strides = array<i32>} : memref<8x128xf32, #tpu.memory_space<vmem>>, vector<8x128xf32>,
    %c0_13 = arith.constant 0 : index
    %c0_14 = arith.constant 0 : index
    %34 = vector.load %arg6[%c0_13, %c0_14] : memref<8x128xf32, #tpu.memory_space<vmem>>, vector<8x128xf32>
    %35 = arith.addf %34, %30 : vector<8x128xf32>
    %c0_15 = arith.constant 0 : index
    %c0_16 = arith.constant 0 : index
    %36 = vector.load %arg6[%c0_15, %c0_16] : memref<8x128xf32, #tpu.memory_space<vmem>>, vector<8x128xf32>
    tpu.vector_store %arg6[%c0_15, %c0_16], %35 {strides = array<i32>} : memref<8x128xf32, #tpu.memory_space<vmem>>, vector<8x128xf32>,
    %c0_i32_17 = arith.constant 0 : i32
    %37 = arith.cmpi eq, %arg0, %c0_i32_17 : i32
    %38 = arith.extui %37 : i1 to i32
    %c0_i32_18 = arith.constant 0 : i32
    %39 = arith.cmpi ne, %38, %c0_i32_18 : i32
    scf.if %39 {
      %c0_19 = arith.constant 0 : index
      %c0_20 = arith.constant 0 : index
      %40 = vector.load %arg5[%c0_19, %c0_20] : memref<8x128xf32, #tpu.memory_space<vmem>>, vector<8x128xf32>
      %41 = vector.shape_cast %40 : vector<8x128xf32> to vector<1x8x128xf32>
      %cst_21 = arith.constant dense<0.000000e+00> : vector<1xf32>
      %42 = vector.multi_reduction <add>, %41, %cst_21 [1, 2] : vector<1x8x128xf32> to vector<1xf32>
      %43 = vector.shape_cast %42 : vector<1xf32> to vector<1x1x1xf32>
      %44 = vector.extract %43[0, 0, 0] : f32 from vector<1x1x1xf32>
      %45 = vector.broadcast %44 : f32 to vector<1x1xf32>
      %c0_22 = arith.constant 0 : index
      %c0_23 = arith.constant 0 : index
      %46 = vector.load %arg6[%c0_22, %c0_23] : memref<8x128xf32, #tpu.memory_space<vmem>>, vector<8x128xf32>
      %47 = vector.shape_cast %46 : vector<8x128xf32> to vector<1x8x128xf32>
      %cst_24 = arith.constant dense<0.000000e+00> : vector<1xf32>
      %48 = vector.multi_reduction <add>, %47, %cst_24 [1, 2] : vector<1x8x128xf32> to vector<1xf32>
      %49 = vector.shape_cast %48 : vector<1xf32> to vector<1x1x1xf32>
      %50 = vector.extract %49[0, 0, 0] : f32 from vector<1x1x1xf32>
      %51 = vector.broadcast %50 : f32 to vector<1x1xf32>
      %cst_25 = arith.constant 2.000000e+00 : f32
      %52 = vector.broadcast %cst_25 : f32 to vector<1x1xf32>
      %53 = arith.mulf %52, %45 : vector<1x1xf32>
      %cst_26 = arith.constant 1.000000e+00 : f32
      %54 = vector.broadcast %cst_26 : f32 to vector<1x1xf32>
      %55 = arith.addf %53, %54 : vector<1x1xf32>
      %cst_27 = arith.constant 1.000000e+00 : f32
      %56 = vector.broadcast %cst_27 : f32 to vector<1x1xf32>
      %57 = arith.addf %51, %56 : vector<1x1xf32>
      %58 = arith.divf %55, %57 : vector<1x1xf32>
      %cst_28 = arith.constant 1.000000e+00 : f32
      %59 = vector.broadcast %cst_28 : f32 to vector<1x1xf32>
      %60 = arith.subf %59, %58 : vector<1x1xf32>
      %c0_29 = arith.constant 0 : index
      %c0_30 = arith.constant 0 : index
      %61 = vector.load %arg4[%c0_29, %c0_30] : memref<1x1xf32, #tpu.memory_space<vmem>>, vector<1x1xf32>
      tpu.vector_store %arg4[%c0_29, %c0_30], %60 {strides = array<i32>} : memref<1x1xf32, #tpu.memory_space<vmem>>, vector<1x1xf32>,
    } else {
    }
    return
  }
  func.func @transform_0(%arg0: i32, %arg1: memref<1xi32, #tpu.memory_space<smem>>) -> (i32, i32) {
    %c0_i32 = arith.constant 0 : i32
    %c0_i32_0 = arith.constant 0 : i32
    return %arg0, %c0_i32 : i32, i32
  }
  func.func @transform_1(%arg0: i32, %arg1: memref<1xi32, #tpu.memory_space<smem>>) -> (i32, i32) {
    %c0_i32 = arith.constant 0 : i32
    %c0_i32_0 = arith.constant 0 : i32
    return %arg0, %c0_i32 : i32, i32
  }
  func.func @transform_2(%arg0: i32, %arg1: memref<1xi32, #tpu.memory_space<smem>>) -> (i32, i32) {
    %c0_i32 = arith.constant 0 : i32
    %c0_i32_0 = arith.constant 0 : i32
    %c0_i32_1 = arith.constant 0 : i32
    return %c0_i32, %c0_i32_0 : i32, i32
  }
}

</mosaic_0001>

<bundles_post_ra>
// kernel: tpu_custom_call.1
= control target key start
LH: loop header
LB: loop body
LE: loop exit
PB: predicated region body
PF: predicated region fallthrough
CT: control target
= control target key end

     0   :  { %9 = vsyncpa [#allocation7], 0  ;;  %s303_s0 = inlined_call_operand.<no memory space> [shape: s32[1], index: 0, kind: input, shape index: {}]   ;;  %s304_s1 = inlined_call_operand.hbm [shape: f32[16,128], index: 1, kind: input, shape index: {}]   ;;  %s305_s2 = inlined_call_operand.hbm [shape: f32[16,128], index: 2, kind: input, shape index: {}]   ;;  %s306_s3 = inlined_call_operand.hbm [shape: f32[1,1], index: 3, kind: output, shape index: {}]  }
   0x1   :  { %10 = vsyncpa [#allocation10], 0 }
   0x2   :  { %11 = vsyncpa [#allocation8], 0  ;;  %s239_s12 = smov [#allocation6]   ;;  %s167_s16 = scalar_lea.hbm %s304_s1, 256 }
   0x3   :  { %s17_s13 = sshll.u32 %s239_s12, 4  ;;  %p168_p0 = scmp.ne.s32.totalorder %s304_s1, %s167_s16  ;;  %s18_s13 = int_to_ptr.vmem [resolvable:$true] %s17_s13 }
   0x4   :  { %p171_p1 = scmp.lt.u32.totalorder %s167_s16, %s304_s1 }
   0x6   :  { %p173_p2 = pnand %p171_p1, %p168_p0 }
   0x8   :  { %176 = shalt.err (!%p173_p2)
}
   0x9   :  { %s177_s21 = scalar_lea.vmem %s18_s13, 256  ;;  %p182_p4 = scmp.lt.s32.totalorder %s18_s13, %s18_s13 }
   0xa   :  { %p178_p3 = scmp.ne.s32.totalorder %s18_s13, %s177_s21  ;;  %p183_p5 = scmp.lt.s32.totalorder %s177_s21, %s177_s21 }
   0xc   :  { %p184_p6 = por %p183_p5, %p182_p4 }
   0xe   :  { %p185_p7 = pnand %p184_p6, %p178_p3 }
  0x10   :  { %188 = shalt.err (!%p185_p7)
}
  0x11   :  { %s240_s22 = smov 128   ;;  %s241_s23 = smov 8  }
  0x12   :  { %23 = dma.hbm_to_vmem [thread:$0]  %s304_s1, 256, %s18_s13, [#allocation7], %s240_s22, %s240_s22, %s241_s23  }
  0x13   :  { %s242_s26 = smov [#allocation9]   ;;  %s189_s30 = scalar_lea.hbm %s305_s2, 256 }
  0x14   :  { %s29_s27 = sshll.u32 %s242_s26, 4  ;;  %p190_p8 = scmp.ne.s32.totalorder %s305_s2, %s189_s30  ;;  %s30_s27 = int_to_ptr.vmem [resolvable:$true] %s29_s27 }
  0x15   :  { %p193_p9 = scmp.lt.u32.totalorder %s189_s30, %s305_s2 }
  0x17   :  { %p195_p10 = pnand %p193_p9, %p190_p8 }
  0x19   :  { %198 = shalt.err (!%p195_p10)
}
  0x1a   :  { %s199_s8 = scalar_lea.vmem %s30_s27, 256  ;;  %p204_p12 = scmp.lt.s32.totalorder %s30_s27, %s30_s27 }
  0x1b   :  { %p200_p11 = scmp.ne.s32.totalorder %s30_s27, %s199_s8  ;;  %p205_p13 = scmp.lt.s32.totalorder %s199_s8, %s199_s8 }
  0x1d   :  { %p206_p0 = por %p205_p13, %p204_p12 }
  0x1f   :  { %p207_p1 = pnand %p206_p0, %p200_p11 }
  0x21   :  { %210 = shalt.err (!%p207_p1)
}
  0x22   :  { %35 = dma.hbm_to_vmem [thread:$0]  %s305_s2, 256, %s30_s27, [#allocation10], %s240_s22, %s240_s22, %s241_s23  }
  0x23   :  { %233 = dma.done.wait [#allocation7], 256  }
  0x24   :  { %234 = vsyncadd [#allocation7], 4294967040 }
  0x25   :  { %235 = dma.done.wait [#allocation10], 256  }
  0x26   :  { %236 = vsyncadd [#allocation10], 4294967040  ;;  %v65_v0 = vld [vmem:[#allocation6] sm:$0xff]  ;;  %v66_v1 = vld [vmem:[#allocation6 + $0x8] sm:$0xff]  ;;  %v49_v4 = vlaneseq  ;;  %v62_v16 = vstv %s303_s0  ;;  %s243_s12 = smov [#allocation11]   ;;  %vm128_vm2 = vcmask 0  }
  0x27   :  { %v146_v2 = vmul.f32 -1.442695, %v65_v0  ;;  %v147_v3 = vmul.f32 -1.442695, %v66_v1  ;;  %v79_v17 = vld [vmem:[#allocation9] sm:$0xff]  ;;  %v80_v18 = vld [vmem:[#allocation9 + $0x8] sm:$0xff] }
  0x28   :  { %v50_v5 = vshrl.u32 %v49_v4, 7  ;;  %v53_v9 = vand.u32 127, %v49_v4  ;;  %s136_s13 = sshll.u32 %s243_s12, 4  ;;  %s137_s13 = int_to_ptr.vmem [resolvable:$true] %s136_s13 }
  0x29   :  { %157 = vpow2.f32 %v146_v2  ;;  %s211_s14 = scalar_lea.vmem %s137_s13, 16  ;;  %s215_s15 = scalar_lea.vmem %s137_s13, 32 }
  0x2a   :  { %159 = vpow2.f32 %v147_v3  ;;  %v51_v6 = vadd.s32 8, %v50_v5  ;;  %v58_v10 = vmul.u32 128, %v50_v5  ;;  %p212_p2 = scmp.ne.s32.totalorder %s137_s13, %s211_s14  ;;  %p216_p3 = scmp.lt.s32.totalorder %s137_s13, %s137_s13 }
  0x2b   :  { %p217_p4 = scmp.lt.s32.totalorder %s215_s15, %s211_s14 }
  0x2c   :  { %v59_v12 = vmul.u32 128, %v51_v6  ;;  %v60_v14 = vadd.s32 %v58_v10, %v53_v9 }
  0x2d   :  { %p218_p5 = por %p217_p4, %p216_p3 }
  0x2e   :  { %v61_v15 = vadd.s32 %v59_v12, %v53_v9  ;;  %vm63_vm0 = vcmp.lt.s32.totalorder %v60_v14, %v62_v16 }
  0x2f   :  { %v83_v19 = vsel %vm63_vm0, %v79_v17, 0.0  ;;  %p219_p6 = pnand %p218_p5, %p212_p2 }
  0x30   :  { %vm64_vm1 = vcmp.lt.s32.totalorder %v61_v15, %v62_v16 }
  0x31   :  { %v84_v21 = vsel %vm64_vm1, %v80_v18, 0.0 }
  0x33   :  { %v158_v7 = vpop.eup %157 }
  0x34   :  { %v160_v8 = vpop.eup %159  ;;  %v73_v11 = vadd.f32 1.0, %v158_v7 }
  0x35   :  { %v74_v13 = vadd.f32 1.0, %v160_v8 }
  0x36   :  { %161 = vrcp.f32 %v73_v11 }
  0x37   :  { %163 = vrcp.f32 %v74_v13 }
  0x40   :  { %v162_v20 = vpop.eup %161 }
  0x41   :  { %v164_v22 = vpop.eup %163  ;;  %v81_v23 = vsel %vm63_vm0, %v162_v20, 0.0 }
  0x42   :  { %v82_v24 = vsel %vm64_vm1, %v164_v22, 0.0  ;;  %v85_v25 = vmul.f32 %v83_v19, %v81_v23  ;;  %v88_v27 = vadd.f32 %v83_v19, %v81_v23 }
  0x43   :  { %v86_v26 = vmul.f32 %v84_v21, %v82_v24  ;;  %v89_v28 = vadd.f32 %v84_v21, %v82_v24 }
  0x45   :  { %v87_v29 = vadd.f32 %v86_v26, %v85_v25  ;;  %v90_v30 = vadd.f32 %v89_v28, %v88_v27 }
  0x47   :  { %101 = vadd.xlane.f32.xlu0 %v87_v29 }
  0x4b   :  { %112 = vadd.xlane.f32.xlu0 %v90_v30 }
  0xd4   :  { %v102_v31 = vpop.xlane.xlu0 %101 }
  0xd5   :  { %v103_v32 = vrot.slane %v102_v31, 4 }
  0xd7   :  { %v104_v33 = vadd.f32 %v103_v32, %v102_v31 }
  0xd8   :  { %v113_v34 = vpop.xlane.xlu0 %112 }
  0xd9   :  { %v105_v35 = vrot.slane %v104_v33, 2  ;;  %v114_v36 = vrot.slane %v113_v34, 4 }
  0xdb   :  { %v115_v37 = vadd.f32 %v114_v36, %v113_v34  ;;  %v106_v38 = vadd.f32 %v105_v35, %v104_v33 }
  0xdd   :  { %v116_v39 = vrot.slane %v115_v37, 2  ;;  %v107_v40 = vrot.slane %v106_v38, 1 }
  0xdf   :  { %v117_v41 = vadd.f32 %v116_v39, %v115_v37  ;;  %v108_v42 = vadd.f32 %v107_v40, %v106_v38 }
  0xe1   :  { %148 = vpush %v108_v42  ;;  %v118_v43 = vrot.slane %v117_v41, 1 }
  0xe3   :  { %v119_v44 = vadd.f32 %v118_v43, %v117_v41 }
  0xe5   :  { %150 = vpush %v119_v44 }
 0x112   :  { %s149_s0 = spop %148 }
 0x113   :  { %v110_v47 = vstv %s149_s0 }
 0x114   :  { %v122_v48 = vmul.f32 2.0, %v110_v47 }
 0x116   :  { %s151_s11 = spop %150  ;;  %v123_v49 = vadd.f32 1.0, %v122_v48 }
 0x117   :  { %v121_v45 = vstv %s151_s11 }
 0x118   :  { %v124_v46 = vadd.f32 1.0, %v121_v45 }
 0x11a   :  { %165 = vrcp.f32 %v124_v46 }
 0x124   :  { %v166_v50 = vpop.eup %165 }
 0x125   :  { %v126_v51 = vmul.f32 %v166_v50, %v123_v49 }
 0x127   :  { %v127_v52 = vsub.f32 1.0, %v126_v51 }
 0x129   :  { %129 = vst.msk [vmem:[#allocation11] sm:$0x1] %vm128_vm2, %v127_v52 }
 0x12a   :  { %222 = shalt.err (!%p219_p6)
}
 0x12b   :  { %s223_s18 = scalar_lea.hbm %s306_s3, 16 }
 0x12c   :  { %p224_p7 = scmp.ne.s32.totalorder %s306_s3, %s223_s18  ;;  %p227_p8 = scmp.lt.u32.totalorder %s223_s18, %s306_s3 }
 0x12e   :  { %p229_p9 = pnand %p227_p8, %p224_p7 }
 0x130   :  { %232 = shalt.err (!%p229_p9)
}
 0x131   :  { %139 = dma.vmem_to_hbm [thread:$0]  %s137_s13, 16, %s306_s3, [#allocation8]  }
 0x132   :  { %237 = dma.done.wait [#allocation8], 16  }
 0x133   :  { %238 = vsyncadd [#allocation8], 4294967280 }
 0x134   :  { %143 = vsyncpa [#allocation7], 1 }
 0x135   :  { %144 = vsyncpa [#allocation10], 1 }
 0x136   :  { %145 = vsyncpa [#allocation8], 1 }

</bundles_post_ra>
